<compile_context>
chip_gen: v7x
topology: tpu7x:2x2x1
jax: 0.10.0
libtpu: 0.0.40
codegen_flags: <defaults>
</compile_context>

<pallas_src>
import jax
import jax.numpy as jnp
from jax.experimental import pallas as pl
from jax.experimental.pallas import tpu as pltpu

EPS = 1e-5
NEG_SLOPE = 0.01  # nn.LeakyReLU default
LANES = 128


def _round_up(n, m):
    return ((n + m - 1) // m) * m


def _bn(h, gamma, beta):
    # Single-pass training-mode BatchNorm1d: biased batch stats computed as
    # E[x^2] - mean^2 and folded into one per-feature scale/shift.
    # Padded feature columns: h == 0 and gamma == beta == 0 -> output exactly 0.
    n = h.shape[0]
    inv_n = 1.0 / n
    s = jnp.sum(h, axis=0, keepdims=True)
    ss = jnp.sum(h * h, axis=0, keepdims=True)
    mean = s * inv_n
    var = ss * inv_n - mean * mean
    scale = gamma * jax.lax.rsqrt(var + EPS)
    shift = beta - mean * scale
    return h * scale + shift


def _leaky_relu(h):
    return jnp.where(h > 0, h, NEG_SLOPE * h)


def mlp_kernel(ids_ref, x_ref, w1_ref, w2_ref, vec_ref, out_ref, x_vmem):
    # x_ref   : [num_nodes, 1, half_pad] f32  embedding table (VMEM resident)
    # w1_ref  : [fin_pad, h_pad] bf16 ; w2_ref: [h_pad, h_pad] bf16
    # vec_ref : [10, W] f32 packed per-feature vectors
    # x_vmem  : [B, fin_pad] f32 scratch (gathered, lane-padded input)
    B = out_ref.shape[0]
    half_pad = x_ref.shape[2]
    fin_pad = x_vmem.shape[1]
    h_pad = w1_ref.shape[1]

    # ---- fused gather: dynamic leading-dim indexing of the VMEM table ----
    # ids live in SMEM (scalar prefetch); every store is full-lane aligned.
    for b in range(B):
        x_vmem[pl.ds(b, 1), pl.ds(0, half_pad)] = x_ref[ids_ref[b, 0]]
        x_vmem[pl.ds(b, 1), pl.ds(half_pad, half_pad)] = x_ref[ids_ref[b, 1]]
    x = x_vmem[...]                                           # [B, fin_pad]

    # ---- packed per-feature vectors (one slab) ----
    # NOTE: padded lanes of gamma/beta/bias/w3 MUST be zero -- the rsqrt(0+eps)
    # blow-up on padded features is multiplied away by gamma==0 before the
    # matmuls.  prepare_params() guarantees this; keep the convention.
    g0, b0 = vec_ref[0:1, :fin_pad], vec_ref[1:2, :fin_pad]
    c1, g1, be1 = vec_ref[2:3, :h_pad], vec_ref[3:4, :h_pad], vec_ref[4:5, :h_pad]
    c2, g2, be2 = vec_ref[5:6, :h_pad], vec_ref[6:7, :h_pad], vec_ref[7:8, :h_pad]
    w3_row = vec_ref[8:9, :h_pad]
    c3 = vec_ref[9:10, 0:1]

    # ---- MLP (BN / LeakyReLU in f32; matmul operands bf16 on the MXU) ----
    h = _bn(x, g0, b0)                                        # BatchNorm1d(6D)
    h = jnp.dot(h.astype(jnp.bfloat16), w1_ref[...],
                preferred_element_type=jnp.float32) + c1
    h = _leaky_relu(_bn(h, g1, be1))                          # Dropout = identity
    h = jnp.dot(h.astype(jnp.bfloat16), w2_ref[...],
                preferred_element_type=jnp.float32) + c2
    h = _leaky_relu(_bn(h, g2, be2))                          # Dropout = identity

    # final Linear(H, 1): VPU multiply + lane reduction (N=1 MXU matmul wasteful)
    red = jnp.sum(h * w3_row, axis=-1, keepdims=True) + c3    # [B, 1] f32
    # lane-dense store; wrapper reads column 0.
    # TODO(synk): for large B, pack 128 row-results per output row instead of
    # broadcasting to avoid the 128x writeback inflation.
    out_ref[...] = jnp.broadcast_to(red, out_ref.shape)


def prepare_table(X):
    """One-time: flatten + zero-pad each embedding row to a full 128-lane tile.

    Returns [num_nodes, 1, half_pad]; the leading dim is untiled so in-kernel
    dynamic row indexing is a plain address offset.
    """
    num_nodes, _, D = X.shape
    half = 3 * D
    half_pad = _round_up(half, LANES)
    X2d = X.reshape(num_nodes, half)
    X2d = jnp.pad(X2d, ((0, 0), (0, half_pad - half)))
    return X2d.reshape(num_nodes, 1, half_pad)


def prepare_params(params, emb_dim):
    """One-time padding / packing of MLP parameters (hoisted out of forward)."""
    half = 3 * emb_dim
    half_pad = _round_up(half, LANES)
    fin_pad = 2 * half_pad
    H = params["w1"].shape[1]
    h_pad = _round_up(H, LANES)
    W = max(fin_pad, h_pad)

    # w1 rows follow the padded input layout: real features at rows [0, half)
    # and [half_pad, half_pad+half); padded rows/cols are exact zeros.
    w1 = params["w1"]
    w1_top = jnp.pad(w1[:half], ((0, half_pad - half), (0, h_pad - H)))
    w1_bot = jnp.pad(w1[half:], ((0, half_pad - half), (0, h_pad - H)))
    w1p = jnp.concatenate([w1_top, w1_bot], axis=0).astype(jnp.bfloat16)
    w2p = jnp.pad(params["w2"], ((0, h_pad - H), (0, h_pad - H))).astype(jnp.bfloat16)

    def pad_in(v):   # [1, 6D] -> [1, W], same split layout as the gathered x
        a = jnp.pad(v[:, :half], ((0, 0), (0, half_pad - half)))
        b = jnp.pad(v[:, half:], ((0, 0), (0, half_pad - half)))
        return jnp.pad(jnp.concatenate([a, b], axis=-1), ((0, 0), (0, W - fin_pad)))

    def pad_h(v):    # [1, H] or [1, 1] -> [1, W]
        return jnp.pad(v, ((0, 0), (0, W - v.shape[1])))

    # pack all per-feature row vectors into one VMEM slab (padded lanes = 0)
    vecs = jnp.concatenate([
        pad_in(params["g0"]), pad_in(params["b0"]),                     # 0,1: BN0
        pad_h(params["c1"]), pad_h(params["g1"]), pad_h(params["be1"]),  # 2,3,4
        pad_h(params["c2"]), pad_h(params["g2"]), pad_h(params["be2"]),  # 5,6,7
        pad_h(params["w3"].T), pad_h(params["c3"]),                      # 8: w3 row, 9: c3
    ], axis=0).astype(jnp.float32)                                       # [10, W]

    return {"w1p": w1p, "w2p": w2p, "vecs": vecs,
            "half_pad": half_pad, "fin_pad": fin_pad, "h_pad": h_pad, "W": W}


def mlp_forward_pallas(X_pad, ids, prepped):
    """X_pad: prepare_table(X); ids: [B, 2] int; prepped: prepare_params(...)."""
    B = ids.shape[0]
    # TODO(synk): arbitrary B needs rounding + masked BN stats; demo B=8 is exact.
    assert B % 8 == 0, "batch must be a multiple of the f32 sublane tile (8)"

    num_nodes, _, half_pad = X_pad.shape
    fin_pad, h_pad, W = prepped["fin_pad"], prepped["h_pad"], prepped["W"]
    w1p, w2p, vecs = prepped["w1p"], prepped["w2p"], prepped["vecs"]

    grid_spec = pltpu.PrefetchScalarGridSpec(
        num_scalar_prefetch=1,
        grid=(1,),
        in_specs=[
            pl.BlockSpec((num_nodes, 1, half_pad), lambda i, ids_ref: (0, 0, 0)),  # table
            pl.BlockSpec((fin_pad, h_pad), lambda i, ids_ref: (0, 0)),             # w1 (bf16)
            pl.BlockSpec((h_pad, h_pad), lambda i, ids_ref: (0, 0)),               # w2 (bf16)
            pl.BlockSpec((vecs.shape[0], W), lambda i, ids_ref: (0, 0)),           # vec slab
        ],
        out_specs=pl.BlockSpec((B, LANES), lambda i, ids_ref: (0, 0)),
        scratch_shapes=[
            pltpu.VMEM((B, fin_pad), jnp.float32),      # gathered, lane-padded input
        ],
    )

    out = pl.pallas_call(
        mlp_kernel,
        out_shape=jax.ShapeDtypeStruct((B, LANES), jnp.float32),
        grid_spec=grid_spec,
        # footprint < 1 MiB -> default scoped VMEM is plenty on v5e/v6e/v7x.
        compiler_params=pltpu.CompilerParams(dimension_semantics=("arbitrary",)),
    )(ids.astype(jnp.int32), X_pad, w1p, w2p, vecs)

    # kernel writes a lane-dense [B, 128] slab; column 0 holds the result
    return out[:, :1]


def mlp_forward_ref(x, p):
    """Pure-JAX reference (unpadded params, bf16 matmuls mirroring the MXU path)."""
    def bn(h, gamma, beta):
        mean = jnp.mean(h, axis=0, keepdims=True)
        var = jnp.mean((h - mean) ** 2, axis=0, keepdims=True)
        return (h - mean) * jax.lax.rsqrt(var + EPS) * gamma + beta

    def mm(a, w):
        return jnp.dot(a.astype(jnp.bfloat16), w.astype(jnp.bfloat16),
                       preferred_element_type=jnp.float32)

    h = bn(x, p["g0"], p["b0"])
    h = mm(h, p["w1"]) + p["c1"]
    h = _leaky_relu(bn(h, p["g1"], p["be1"]))
    h = mm(h, p["w2"]) + p["c2"]
    h = _leaky_relu(bn(h, p["g2"], p["be2"]))
    return h @ p["w3"] + p["c3"]          # final layer in f32, like the kernel


def xavier_uniform(key, fan_in, fan_out):
    a = (6.0 / (fan_in + fan_out)) ** 0.5
    # stored as [in, out] (transposed relative to torch's [out, in])
    return jax.random.uniform(key, (fan_in, fan_out), jnp.float32, -a, a)


def linear_bias(key, fan_in, fan_out):
    bound = 1.0 / (fan_in ** 0.5)
    return jax.random.uniform(key, (1, fan_out), jnp.float32, -bound, bound)


def make_params(key, in_dim, hidden):
    ks = jax.random.split(key, 6)
    p = {}
    # BatchNorm default init: gamma=1, beta=0 (kept as [1, F] rows for lane layout)
    p["g0"], p["b0"] = jnp.ones((1, in_dim), jnp.float32), jnp.zeros((1, in_dim), jnp.float32)
    p["w1"], p["c1"] = xavier_uniform(ks[0], in_dim, hidden), linear_bias(ks[1], in_dim, hidden)
    p["g1"], p["be1"] = jnp.ones((1, hidden), jnp.float32), jnp.zeros((1, hidden), jnp.float32)
    p["w2"], p["c2"] = xavier_uniform(ks[2], hidden, hidden), linear_bias(ks[3], hidden, hidden)
    p["g2"], p["be2"] = jnp.ones((1, hidden), jnp.float32), jnp.zeros((1, hidden), jnp.float32)
    p["w3"], p["c3"] = xavier_uniform(ks[4], hidden, 1), linear_bias(ks[5], hidden, 1)
    return p


if __name__ == "__main__":
    key = jax.random.PRNGKey(0)
    k_emb, k_ids, k_par = jax.random.split(key, 3)

    # Small shapes consistent with the module:
    # embs X: [num_nodes, 3, D] (3 per-node vectors -> flattened = 3D; cat(u,i) = 6D)
    num_nodes, D = 10, 16
    batch, hidden = 8, 32
    X = jax.random.normal(k_emb, (num_nodes, 3, D), jnp.float32)
    ids = jax.random.randint(k_ids, (batch, 2), 0, num_nodes)

    params = make_params(k_par, 6 * D, hidden)

    # one-time padding / packing (hoisted out of the per-step forward)
    X_pad = prepare_table(X)
    prepped = prepare_params(params, D)

    # fused kernel: gather + concat + BN/Linear stack all inside one pallas_call
    out = mlp_forward_pallas(X_pad, ids, prepped)
    out = jax.block_until_ready(out)

    # pure-JAX reference (explicit gather/concat, unpadded params)
    X_u = X[ids[:, 0]].reshape(batch, -1)
    X_i = X[ids[:, 1]].reshape(batch, -1)
    x = jnp.concatenate([X_u, X_i], axis=-1)
    ref = mlp_forward_ref(x, params)

    assert out.shape == (batch, 1)
    assert jnp.allclose(out, ref, atol=2e-3, rtol=2e-3), "mismatch vs JAX reference"

    print("KERNEL_OK")
</pallas_src>

<mosaic_0001>
module attributes {stable_mosaic.version = 11 : i64} {
  func.func @mlp_kernel(%arg0: i32, %arg1: memref<8x2xi32, #tpu.memory_space<smem>>, %arg2: memref<10x1x128xf32, #tpu.memory_space<vmem>>, %arg3: memref<256x128xbf16, #tpu.memory_space<vmem>>, %arg4: memref<128x128xbf16, #tpu.memory_space<vmem>>, %arg5: memref<10x256xf32, #tpu.memory_space<vmem>>, %arg6: memref<8x128xf32, #tpu.memory_space<vmem>>, %arg7: memref<8x256xf32, #tpu.memory_space<vmem>>) attributes {dimension_semantics = [#tpu.dimension_semantics<arbitrary>], iteration_bounds = array<i64: 1>, scalar_prefetch = 1 : i64, scratch_operands = 1 : i64, tpu.core_type = #tpu.core_type<tc>, window_params = [{pipeline_mode = #tpu.pipeline_mode<synchronous>, transform_indices = @transform_0, window_bounds = array<i64: 10, 1, 128>}, {pipeline_mode = #tpu.pipeline_mode<synchronous>, transform_indices = @transform_1, window_bounds = array<i64: 256, 128>}, {pipeline_mode = #tpu.pipeline_mode<synchronous>, transform_indices = @transform_2, window_bounds = array<i64: 128, 128>}, {pipeline_mode = #tpu.pipeline_mode<synchronous>, transform_indices = @transform_3, window_bounds = array<i64: 10, 256>}, {pipeline_mode = #tpu.pipeline_mode<synchronous>, transform_indices = @transform_4, window_bounds = array<i64: 8, 128>}]} {
    %c0 = arith.constant 0 : index
    %c0_0 = arith.constant 0 : index
    %0 = memref.load %arg1[%c0, %c0_0] : memref<8x2xi32, #tpu.memory_space<smem>>
    %1 = arith.index_cast %0 : i32 to index
    %c0_1 = arith.constant 0 : index
    %c0_2 = arith.constant 0 : index
    %2 = vector.load %arg2[%1, %c0_1, %c0_2] : memref<10x1x128xf32, #tpu.memory_space<vmem>>, vector<1x1x128xf32>
    %3 = vector.shape_cast %2 : vector<1x1x128xf32> to vector<1x128xf32>
    %c0_3 = arith.constant 0 : index
    %c0_4 = arith.constant 0 : index
    %4 = vector.load %arg7[%c0_3, %c0_4] : memref<8x256xf32, #tpu.memory_space<vmem>>, vector<1x128xf32>
    tpu.vector_store %arg7[%c0_3, %c0_4], %3 {strides = array<i32>} : memref<8x256xf32, #tpu.memory_space<vmem>>, vector<1x128xf32>,
    %c0_5 = arith.constant 0 : index
    %c1 = arith.constant 1 : index
    %5 = memref.load %arg1[%c0_5, %c1] : memref<8x2xi32, #tpu.memory_space<smem>>
    %6 = arith.index_cast %5 : i32 to index
    %c0_6 = arith.constant 0 : index
    %c0_7 = arith.constant 0 : index
    %7 = vector.load %arg2[%6, %c0_6, %c0_7] : memref<10x1x128xf32, #tpu.memory_space<vmem>>, vector<1x1x128xf32>
    %8 = vector.shape_cast %7 : vector<1x1x128xf32> to vector<1x128xf32>
    %c0_8 = arith.constant 0 : index
    %c128 = arith.constant 128 : index
    %9 = vector.load %arg7[%c0_8, %c128] : memref<8x256xf32, #tpu.memory_space<vmem>>, vector<1x128xf32>
    tpu.vector_store %arg7[%c0_8, %c128], %8 {strides = array<i32>} : memref<8x256xf32, #tpu.memory_space<vmem>>, vector<1x128xf32>,
    %c1_9 = arith.constant 1 : index
    %c0_10 = arith.constant 0 : index
    %10 = memref.load %arg1[%c1_9, %c0_10] : memref<8x2xi32, #tpu.memory_space<smem>>
    %11 = arith.index_cast %10 : i32 to index
    %c0_11 = arith.constant 0 : index
    %c0_12 = arith.constant 0 : index
    %12 = vector.load %arg2[%11, %c0_11, %c0_12] : memref<10x1x128xf32, #tpu.memory_space<vmem>>, vector<1x1x128xf32>
    %13 = vector.shape_cast %12 : vector<1x1x128xf32> to vector<1x128xf32>
    %c1_13 = arith.constant 1 : index
    %c0_14 = arith.constant 0 : index
    %14 = vector.load %arg7[%c1_13, %c0_14] : memref<8x256xf32, #tpu.memory_space<vmem>>, vector<1x128xf32>
    tpu.vector_store %arg7[%c1_13, %c0_14], %13 {strides = array<i32>} : memref<8x256xf32, #tpu.memory_space<vmem>>, vector<1x128xf32>,
    %c1_15 = arith.constant 1 : index
    %c1_16 = arith.constant 1 : index
    %15 = memref.load %arg1[%c1_15, %c1_16] : memref<8x2xi32, #tpu.memory_space<smem>>
    %16 = arith.index_cast %15 : i32 to index
    %c0_17 = arith.constant 0 : index
    %c0_18 = arith.constant 0 : index
    %17 = vector.load %arg2[%16, %c0_17, %c0_18] : memref<10x1x128xf32, #tpu.memory_space<vmem>>, vector<1x1x128xf32>
    %18 = vector.shape_cast %17 : vector<1x1x128xf32> to vector<1x128xf32>
    %c1_19 = arith.constant 1 : index
    %c128_20 = arith.constant 128 : index
    %19 = vector.load %arg7[%c1_19, %c128_20] : memref<8x256xf32, #tpu.memory_space<vmem>>, vector<1x128xf32>
    tpu.vector_store %arg7[%c1_19, %c128_20], %18 {strides = array<i32>} : memref<8x256xf32, #tpu.memory_space<vmem>>, vector<1x128xf32>,
    %c2 = arith.constant 2 : index
    %c0_21 = arith.constant 0 : index
    %20 = memref.load %arg1[%c2, %c0_21] : memref<8x2xi32, #tpu.memory_space<smem>>
    %21 = arith.index_cast %20 : i32 to index
    %c0_22 = arith.constant 0 : index
    %c0_23 = arith.constant 0 : index
    %22 = vector.load %arg2[%21, %c0_22, %c0_23] : memref<10x1x128xf32, #tpu.memory_space<vmem>>, vector<1x1x128xf32>
    %23 = vector.shape_cast %22 : vector<1x1x128xf32> to vector<1x128xf32>
    %c2_24 = arith.constant 2 : index
    %c0_25 = arith.constant 0 : index
    %24 = vector.load %arg7[%c2_24, %c0_25] : memref<8x256xf32, #tpu.memory_space<vmem>>, vector<1x128xf32>
    tpu.vector_store %arg7[%c2_24, %c0_25], %23 {strides = array<i32>} : memref<8x256xf32, #tpu.memory_space<vmem>>, vector<1x128xf32>,
    %c2_26 = arith.constant 2 : index
    %c1_27 = arith.constant 1 : index
    %25 = memref.load %arg1[%c2_26, %c1_27] : memref<8x2xi32, #tpu.memory_space<smem>>
    %26 = arith.index_cast %25 : i32 to index
    %c0_28 = arith.constant 0 : index
    %c0_29 = arith.constant 0 : index
    %27 = vector.load %arg2[%26, %c0_28, %c0_29] : memref<10x1x128xf32, #tpu.memory_space<vmem>>, vector<1x1x128xf32>
    %28 = vector.shape_cast %27 : vector<1x1x128xf32> to vector<1x128xf32>
    %c2_30 = arith.constant 2 : index
    %c128_31 = arith.constant 128 : index
    %29 = vector.load %arg7[%c2_30, %c128_31] : memref<8x256xf32, #tpu.memory_space<vmem>>, vector<1x128xf32>
    tpu.vector_store %arg7[%c2_30, %c128_31], %28 {strides = array<i32>} : memref<8x256xf32, #tpu.memory_space<vmem>>, vector<1x128xf32>,
    %c3 = arith.constant 3 : index
    %c0_32 = arith.constant 0 : index
    %30 = memref.load %arg1[%c3, %c0_32] : memref<8x2xi32, #tpu.memory_space<smem>>
    %31 = arith.index_cast %30 : i32 to index
    %c0_33 = arith.constant 0 : index
    %c0_34 = arith.constant 0 : index
    %32 = vector.load %arg2[%31, %c0_33, %c0_34] : memref<10x1x128xf32, #tpu.memory_space<vmem>>, vector<1x1x128xf32>
    %33 = vector.shape_cast %32 : vector<1x1x128xf32> to vector<1x128xf32>
    %c3_35 = arith.constant 3 : index
    %c0_36 = arith.constant 0 : index
    %34 = vector.load %arg7[%c3_35, %c0_36] : memref<8x256xf32, #tpu.memory_space<vmem>>, vector<1x128xf32>
    tpu.vector_store %arg7[%c3_35, %c0_36], %33 {strides = array<i32>} : memref<8x256xf32, #tpu.memory_space<vmem>>, vector<1x128xf32>,
    %c3_37 = arith.constant 3 : index
    %c1_38 = arith.constant 1 : index
    %35 = memref.load %arg1[%c3_37, %c1_38] : memref<8x2xi32, #tpu.memory_space<smem>>
    %36 = arith.index_cast %35 : i32 to index
    %c0_39 = arith.constant 0 : index
    %c0_40 = arith.constant 0 : index
    %37 = vector.load %arg2[%36, %c0_39, %c0_40] : memref<10x1x128xf32, #tpu.memory_space<vmem>>, vector<1x1x128xf32>
    %38 = vector.shape_cast %37 : vector<1x1x128xf32> to vector<1x128xf32>
    %c3_41 = arith.constant 3 : index
    %c128_42 = arith.constant 128 : index
    %39 = vector.load %arg7[%c3_41, %c128_42] : memref<8x256xf32, #tpu.memory_space<vmem>>, vector<1x128xf32>
    tpu.vector_store %arg7[%c3_41, %c128_42], %38 {strides = array<i32>} : memref<8x256xf32, #tpu.memory_space<vmem>>, vector<1x128xf32>,
    %c4 = arith.constant 4 : index
    %c0_43 = arith.constant 0 : index
    %40 = memref.load %arg1[%c4, %c0_43] : memref<8x2xi32, #tpu.memory_space<smem>>
    %41 = arith.index_cast %40 : i32 to index
    %c0_44 = arith.constant 0 : index
    %c0_45 = arith.constant 0 : index
    %42 = vector.load %arg2[%41, %c0_44, %c0_45] : memref<10x1x128xf32, #tpu.memory_space<vmem>>, vector<1x1x128xf32>
    %43 = vector.shape_cast %42 : vector<1x1x128xf32> to vector<1x128xf32>
    %c4_46 = arith.constant 4 : index
    %c0_47 = arith.constant 0 : index
    %44 = vector.load %arg7[%c4_46, %c0_47] : memref<8x256xf32, #tpu.memory_space<vmem>>, vector<1x128xf32>
    tpu.vector_store %arg7[%c4_46, %c0_47], %43 {strides = array<i32>} : memref<8x256xf32, #tpu.memory_space<vmem>>, vector<1x128xf32>,
    %c4_48 = arith.constant 4 : index
    %c1_49 = arith.constant 1 : index
    %45 = memref.load %arg1[%c4_48, %c1_49] : memref<8x2xi32, #tpu.memory_space<smem>>
    %46 = arith.index_cast %45 : i32 to index
    %c0_50 = arith.constant 0 : index
    %c0_51 = arith.constant 0 : index
    %47 = vector.load %arg2[%46, %c0_50, %c0_51] : memref<10x1x128xf32, #tpu.memory_space<vmem>>, vector<1x1x128xf32>
    %48 = vector.shape_cast %47 : vector<1x1x128xf32> to vector<1x128xf32>
    %c4_52 = arith.constant 4 : index
    %c128_53 = arith.constant 128 : index
    %49 = vector.load %arg7[%c4_52, %c128_53] : memref<8x256xf32, #tpu.memory_space<vmem>>, vector<1x128xf32>
    tpu.vector_store %arg7[%c4_52, %c128_53], %48 {strides = array<i32>} : memref<8x256xf32, #tpu.memory_space<vmem>>, vector<1x128xf32>,
    %c5 = arith.constant 5 : index
    %c0_54 = arith.constant 0 : index
    %50 = memref.load %arg1[%c5, %c0_54] : memref<8x2xi32, #tpu.memory_space<smem>>
    %51 = arith.index_cast %50 : i32 to index
    %c0_55 = arith.constant 0 : index
    %c0_56 = arith.constant 0 : index
    %52 = vector.load %arg2[%51, %c0_55, %c0_56] : memref<10x1x128xf32, #tpu.memory_space<vmem>>, vector<1x1x128xf32>
    %53 = vector.shape_cast %52 : vector<1x1x128xf32> to vector<1x128xf32>
    %c5_57 = arith.constant 5 : index
    %c0_58 = arith.constant 0 : index
    %54 = vector.load %arg7[%c5_57, %c0_58] : memref<8x256xf32, #tpu.memory_space<vmem>>, vector<1x128xf32>
    tpu.vector_store %arg7[%c5_57, %c0_58], %53 {strides = array<i32>} : memref<8x256xf32, #tpu.memory_space<vmem>>, vector<1x128xf32>,
    %c5_59 = arith.constant 5 : index
    %c1_60 = arith.constant 1 : index
    %55 = memref.load %arg1[%c5_59, %c1_60] : memref<8x2xi32, #tpu.memory_space<smem>>
    %56 = arith.index_cast %55 : i32 to index
    %c0_61 = arith.constant 0 : index
    %c0_62 = arith.constant 0 : index
    %57 = vector.load %arg2[%56, %c0_61, %c0_62] : memref<10x1x128xf32, #tpu.memory_space<vmem>>, vector<1x1x128xf32>
    %58 = vector.shape_cast %57 : vector<1x1x128xf32> to vector<1x128xf32>
    %c5_63 = arith.constant 5 : index
    %c128_64 = arith.constant 128 : index
    %59 = vector.load %arg7[%c5_63, %c128_64] : memref<8x256xf32, #tpu.memory_space<vmem>>, vector<1x128xf32>
    tpu.vector_store %arg7[%c5_63, %c128_64], %58 {strides = array<i32>} : memref<8x256xf32, #tpu.memory_space<vmem>>, vector<1x128xf32>,
    %c6 = arith.constant 6 : index
    %c0_65 = arith.constant 0 : index
    %60 = memref.load %arg1[%c6, %c0_65] : memref<8x2xi32, #tpu.memory_space<smem>>
    %61 = arith.index_cast %60 : i32 to index
    %c0_66 = arith.constant 0 : index
    %c0_67 = arith.constant 0 : index
    %62 = vector.load %arg2[%61, %c0_66, %c0_67] : memref<10x1x128xf32, #tpu.memory_space<vmem>>, vector<1x1x128xf32>
    %63 = vector.shape_cast %62 : vector<1x1x128xf32> to vector<1x128xf32>
    %c6_68 = arith.constant 6 : index
    %c0_69 = arith.constant 0 : index
    %64 = vector.load %arg7[%c6_68, %c0_69] : memref<8x256xf32, #tpu.memory_space<vmem>>, vector<1x128xf32>
    tpu.vector_store %arg7[%c6_68, %c0_69], %63 {strides = array<i32>} : memref<8x256xf32, #tpu.memory_space<vmem>>, vector<1x128xf32>,
    %c6_70 = arith.constant 6 : index
    %c1_71 = arith.constant 1 : index
    %65 = memref.load %arg1[%c6_70, %c1_71] : memref<8x2xi32, #tpu.memory_space<smem>>
    %66 = arith.index_cast %65 : i32 to index
    %c0_72 = arith.constant 0 : index
    %c0_73 = arith.constant 0 : index
    %67 = vector.load %arg2[%66, %c0_72, %c0_73] : memref<10x1x128xf32, #tpu.memory_space<vmem>>, vector<1x1x128xf32>
    %68 = vector.shape_cast %67 : vector<1x1x128xf32> to vector<1x128xf32>
    %c6_74 = arith.constant 6 : index
    %c128_75 = arith.constant 128 : index
    %69 = vector.load %arg7[%c6_74, %c128_75] : memref<8x256xf32, #tpu.memory_space<vmem>>, vector<1x128xf32>
    tpu.vector_store %arg7[%c6_74, %c128_75], %68 {strides = array<i32>} : memref<8x256xf32, #tpu.memory_space<vmem>>, vector<1x128xf32>,
    %c7 = arith.constant 7 : index
    %c0_76 = arith.constant 0 : index
    %70 = memref.load %arg1[%c7, %c0_76] : memref<8x2xi32, #tpu.memory_space<smem>>
    %71 = arith.index_cast %70 : i32 to index
    %c0_77 = arith.constant 0 : index
    %c0_78 = arith.constant 0 : index
    %72 = vector.load %arg2[%71, %c0_77, %c0_78] : memref<10x1x128xf32, #tpu.memory_space<vmem>>, vector<1x1x128xf32>
    %73 = vector.shape_cast %72 : vector<1x1x128xf32> to vector<1x128xf32>
    %c7_79 = arith.constant 7 : index
    %c0_80 = arith.constant 0 : index
    %74 = vector.load %arg7[%c7_79, %c0_80] : memref<8x256xf32, #tpu.memory_space<vmem>>, vector<1x128xf32>
    tpu.vector_store %arg7[%c7_79, %c0_80], %73 {strides = array<i32>} : memref<8x256xf32, #tpu.memory_space<vmem>>, vector<1x128xf32>,
    %c7_81 = arith.constant 7 : index
    %c1_82 = arith.constant 1 : index
    %75 = memref.load %arg1[%c7_81, %c1_82] : memref<8x2xi32, #tpu.memory_space<smem>>
    %76 = arith.index_cast %75 : i32 to index
    %c0_83 = arith.constant 0 : index
    %c0_84 = arith.constant 0 : index
    %77 = vector.load %arg2[%76, %c0_83, %c0_84] : memref<10x1x128xf32, #tpu.memory_space<vmem>>, vector<1x1x128xf32>
    %78 = vector.shape_cast %77 : vector<1x1x128xf32> to vector<1x128xf32>
    %c7_85 = arith.constant 7 : index
    %c128_86 = arith.constant 128 : index
    %79 = vector.load %arg7[%c7_85, %c128_86] : memref<8x256xf32, #tpu.memory_space<vmem>>, vector<1x128xf32>
    tpu.vector_store %arg7[%c7_85, %c128_86], %78 {strides = array<i32>} : memref<8x256xf32, #tpu.memory_space<vmem>>, vector<1x128xf32>,
    %c0_87 = arith.constant 0 : index
    %c0_88 = arith.constant 0 : index
    %80 = vector.load %arg7[%c0_87, %c0_88] : memref<8x256xf32, #tpu.memory_space<vmem>>, vector<8x256xf32>
    %c0_89 = arith.constant 0 : index
    %c0_90 = arith.constant 0 : index
    %81 = vector.load %arg5[%c0_89, %c0_90] : memref<10x256xf32, #tpu.memory_space<vmem>>, vector<1x256xf32>
    %c1_91 = arith.constant 1 : index
    %c0_92 = arith.constant 0 : index
    %82 = vector.load %arg5[%c1_91, %c0_92] : memref<10x256xf32, #tpu.memory_space<vmem>>, vector<1x256xf32>
    %c2_93 = arith.constant 2 : index
    %c0_94 = arith.constant 0 : index
    %83 = vector.load %arg5[%c2_93, %c0_94] : memref<10x256xf32, #tpu.memory_space<vmem>>, vector<1x128xf32>
    %c3_95 = arith.constant 3 : index
    %c0_96 = arith.constant 0 : index
    %84 = vector.load %arg5[%c3_95, %c0_96] : memref<10x256xf32, #tpu.memory_space<vmem>>, vector<1x128xf32>
    %c4_97 = arith.constant 4 : index
    %c0_98 = arith.constant 0 : index
    %85 = vector.load %arg5[%c4_97, %c0_98] : memref<10x256xf32, #tpu.memory_space<vmem>>, vector<1x128xf32>
    %c5_99 = arith.constant 5 : index
    %c0_100 = arith.constant 0 : index
    %86 = vector.load %arg5[%c5_99, %c0_100] : memref<10x256xf32, #tpu.memory_space<vmem>>, vector<1x128xf32>
    %c6_101 = arith.constant 6 : index
    %c0_102 = arith.constant 0 : index
    %87 = vector.load %arg5[%c6_101, %c0_102] : memref<10x256xf32, #tpu.memory_space<vmem>>, vector<1x128xf32>
    %c7_103 = arith.constant 7 : index
    %c0_104 = arith.constant 0 : index
    %88 = vector.load %arg5[%c7_103, %c0_104] : memref<10x256xf32, #tpu.memory_space<vmem>>, vector<1x128xf32>
    %c8 = arith.constant 8 : index
    %c0_105 = arith.constant 0 : index
    %89 = vector.load %arg5[%c8, %c0_105] : memref<10x256xf32, #tpu.memory_space<vmem>>, vector<1x128xf32>
    %c9 = arith.constant 9 : index
    %c0_106 = arith.constant 0 : index
    %90 = vector.load %arg5[%c9, %c0_106] : memref<10x256xf32, #tpu.memory_space<vmem>>, vector<1x1xf32>
    %cst = arith.constant dense<0.000000e+00> : vector<256xf32>
    %91 = vector.multi_reduction <add>, %80, %cst [0] : vector<8x256xf32> to vector<256xf32>
    %92 = vector.shape_cast %91 : vector<256xf32> to vector<1x256xf32>
    %93 = arith.mulf %80, %80 : vector<8x256xf32>
    %cst_107 = arith.constant dense<0.000000e+00> : vector<256xf32>
    %94 = vector.multi_reduction <add>, %93, %cst_107 [0] : vector<8x256xf32> to vector<256xf32>
    %95 = vector.shape_cast %94 : vector<256xf32> to vector<1x256xf32>
    %cst_108 = arith.constant 1.250000e-01 : f32
    %96 = vector.broadcast %cst_108 : f32 to vector<1x256xf32>
    %97 = arith.mulf %92, %96 : vector<1x256xf32>
    %cst_109 = arith.constant 1.250000e-01 : f32
    %98 = vector.broadcast %cst_109 : f32 to vector<1x256xf32>
    %99 = arith.mulf %95, %98 : vector<1x256xf32>
    %100 = arith.mulf %97, %97 : vector<1x256xf32>
    %101 = arith.subf %99, %100 : vector<1x256xf32>
    %cst_110 = arith.constant 9.99999974E-6 : f32
    %102 = vector.broadcast %cst_110 : f32 to vector<1x256xf32>
    %103 = arith.addf %101, %102 : vector<1x256xf32>
    %104 = math.rsqrt %103 : vector<1x256xf32>
    %105 = arith.mulf %81, %104 : vector<1x256xf32>
    %106 = arith.mulf %97, %105 : vector<1x256xf32>
    %107 = arith.subf %82, %106 : vector<1x256xf32>
    %108 = vector.broadcast %105 : vector<1x256xf32> to vector<8x256xf32>
    %109 = arith.mulf %80, %108 : vector<8x256xf32>
    %110 = vector.broadcast %107 : vector<1x256xf32> to vector<8x256xf32>
    %111 = arith.addf %109, %110 : vector<8x256xf32>
    %112 = arith.truncf %111 : vector<8x256xf32> to vector<8x256xbf16>
    %c0_111 = arith.constant 0 : index
    %c0_112 = arith.constant 0 : index
    %113 = vector.load %arg3[%c0_111, %c0_112] : memref<256x128xbf16, #tpu.memory_space<vmem>>, vector<256x128xbf16>
    %cst_113 = arith.constant dense<0.000000e+00> : vector<8x128xf32>
    %114 = tpu.matmul %112, %113, %cst_113 {dimension_numbers = #tpu.dot_dimension_numbers<[1], [0], [0], [1], [0, 0, 1, 1], [], []>} : vector<8x256xbf16>, vector<256x128xbf16>, vector<8x128xf32> -> vector<8x128xf32>
    %115 = vector.broadcast %83 : vector<1x128xf32> to vector<8x128xf32>
    %116 = arith.addf %114, %115 : vector<8x128xf32>
    %cst_114 = arith.constant dense<0.000000e+00> : vector<128xf32>
    %117 = vector.multi_reduction <add>, %116, %cst_114 [0] : vector<8x128xf32> to vector<128xf32>
    %118 = vector.shape_cast %117 : vector<128xf32> to vector<1x128xf32>
    %119 = arith.mulf %116, %116 : vector<8x128xf32>
    %cst_115 = arith.constant dense<0.000000e+00> : vector<128xf32>
    %120 = vector.multi_reduction <add>, %119, %cst_115 [0] : vector<8x128xf32> to vector<128xf32>
    %121 = vector.shape_cast %120 : vector<128xf32> to vector<1x128xf32>
    %cst_116 = arith.constant 1.250000e-01 : f32
    %122 = vector.broadcast %cst_116 : f32 to vector<1x128xf32>
    %123 = arith.mulf %118, %122 : vector<1x128xf32>
    %cst_117 = arith.constant 1.250000e-01 : f32
    %124 = vector.broadcast %cst_117 : f32 to vector<1x128xf32>
    %125 = arith.mulf %121, %124 : vector<1x128xf32>
    %126 = arith.mulf %123, %123 : vector<1x128xf32>
    %127 = arith.subf %125, %126 : vector<1x128xf32>
    %cst_118 = arith.constant 9.99999974E-6 : f32
    %128 = vector.broadcast %cst_118 : f32 to vector<1x128xf32>
    %129 = arith.addf %127, %128 : vector<1x128xf32>
    %130 = math.rsqrt %129 : vector<1x128xf32>
    %131 = arith.mulf %84, %130 : vector<1x128xf32>
    %132 = arith.mulf %123, %131 : vector<1x128xf32>
    %133 = arith.subf %85, %132 : vector<1x128xf32>
    %134 = vector.broadcast %131 : vector<1x128xf32> to vector<8x128xf32>
    %135 = arith.mulf %116, %134 : vector<8x128xf32>
    %136 = vector.broadcast %133 : vector<1x128xf32> to vector<8x128xf32>
    %137 = arith.addf %135, %136 : vector<8x128xf32>
    %cst_119 = arith.constant 0.000000e+00 : f32
    %138 = vector.broadcast %cst_119 : f32 to vector<8x128xf32>
    %139 = arith.cmpf ogt, %137, %138 : vector<8x128xf32>
    %cst_120 = arith.constant 0.00999999977 : f32
    %140 = vector.broadcast %cst_120 : f32 to vector<8x128xf32>
    %141 = arith.mulf %140, %137 : vector<8x128xf32>
    %142 = arith.select %139, %137, %141 : vector<8x128xi1>, vector<8x128xf32>
    %143 = arith.truncf %142 : vector<8x128xf32> to vector<8x128xbf16>
    %c0_121 = arith.constant 0 : index
    %c0_122 = arith.constant 0 : index
    %144 = vector.load %arg4[%c0_121, %c0_122] : memref<128x128xbf16, #tpu.memory_space<vmem>>, vector<128x128xbf16>
    %cst_123 = arith.constant dense<0.000000e+00> : vector<8x128xf32>
    %145 = tpu.matmul %143, %144, %cst_123 {dimension_numbers = #tpu.dot_dimension_numbers<[1], [0], [0], [1], [0, 0, 1, 1], [], []>} : vector<8x128xbf16>, vector<128x128xbf16>, vector<8x128xf32> -> vector<8x128xf32>
    %146 = vector.broadcast %86 : vector<1x128xf32> to vector<8x128xf32>
    %147 = arith.addf %145, %146 : vector<8x128xf32>
    %cst_124 = arith.constant dense<0.000000e+00> : vector<128xf32>
    %148 = vector.multi_reduction <add>, %147, %cst_124 [0] : vector<8x128xf32> to vector<128xf32>
    %149 = vector.shape_cast %148 : vector<128xf32> to vector<1x128xf32>
    %150 = arith.mulf %147, %147 : vector<8x128xf32>
    %cst_125 = arith.constant dense<0.000000e+00> : vector<128xf32>
    %151 = vector.multi_reduction <add>, %150, %cst_125 [0] : vector<8x128xf32> to vector<128xf32>
    %152 = vector.shape_cast %151 : vector<128xf32> to vector<1x128xf32>
    %cst_126 = arith.constant 1.250000e-01 : f32
    %153 = vector.broadcast %cst_126 : f32 to vector<1x128xf32>
    %154 = arith.mulf %149, %153 : vector<1x128xf32>
    %cst_127 = arith.constant 1.250000e-01 : f32
    %155 = vector.broadcast %cst_127 : f32 to vector<1x128xf32>
    %156 = arith.mulf %152, %155 : vector<1x128xf32>
    %157 = arith.mulf %154, %154 : vector<1x128xf32>
    %158 = arith.subf %156, %157 : vector<1x128xf32>
    %cst_128 = arith.constant 9.99999974E-6 : f32
    %159 = vector.broadcast %cst_128 : f32 to vector<1x128xf32>
    %160 = arith.addf %158, %159 : vector<1x128xf32>
    %161 = math.rsqrt %160 : vector<1x128xf32>
    %162 = arith.mulf %87, %161 : vector<1x128xf32>
    %163 = arith.mulf %154, %162 : vector<1x128xf32>
    %164 = arith.subf %88, %163 : vector<1x128xf32>
    %165 = vector.broadcast %162 : vector<1x128xf32> to vector<8x128xf32>
    %166 = arith.mulf %147, %165 : vector<8x128xf32>
    %167 = vector.broadcast %164 : vector<1x128xf32> to vector<8x128xf32>
    %168 = arith.addf %166, %167 : vector<8x128xf32>
    %cst_129 = arith.constant 0.000000e+00 : f32
    %169 = vector.broadcast %cst_129 : f32 to vector<8x128xf32>
    %170 = arith.cmpf ogt, %168, %169 : vector<8x128xf32>
    %cst_130 = arith.constant 0.00999999977 : f32
    %171 = vector.broadcast %cst_130 : f32 to vector<8x128xf32>
    %172 = arith.mulf %171, %168 : vector<8x128xf32>
    %173 = arith.select %170, %168, %172 : vector<8x128xi1>, vector<8x128xf32>
    %174 = vector.broadcast %89 : vector<1x128xf32> to vector<8x128xf32>
    %175 = arith.mulf %173, %174 : vector<8x128xf32>
    %cst_131 = arith.constant dense<0.000000e+00> : vector<8xf32>
    %176 = vector.multi_reduction <add>, %175, %cst_131 [1] : vector<8x128xf32> to vector<8xf32>
    %177 = vector.shape_cast %176 : vector<8xf32> to vector<8x1xf32>
    %178 = vector.broadcast %90 : vector<1x1xf32> to vector<8x1xf32>
    %179 = arith.addf %177, %178 : vector<8x1xf32>
    %180 = vector.shape_cast %179 : vector<8x1xf32> to vector<8x1xf32>
    %181 = vector.broadcast %180 : vector<8x1xf32> to vector<8x128xf32>
    %c0_132 = arith.constant 0 : index
    %c0_133 = arith.constant 0 : index
    %182 = vector.load %arg6[%c0_132, %c0_133] : memref<8x128xf32, #tpu.memory_space<vmem>>, vector<8x128xf32>
    tpu.vector_store %arg6[%c0_132, %c0_133], %181 {strides = array<i32>} : memref<8x128xf32, #tpu.memory_space<vmem>>, vector<8x128xf32>,
    return
  }
  func.func @transform_0(%arg0: i32, %arg1: memref<8x2xi32, #tpu.memory_space<smem>>) -> (i32, i32, i32) {
    %c0_i32 = arith.constant 0 : i32
    %c0_i32_0 = arith.constant 0 : i32
    %c0_i32_1 = arith.constant 0 : i32
    %c0_i32_2 = arith.constant 0 : i32
    return %c0_i32, %c0_i32_0, %c0_i32_1 : i32, i32, i32
  }
  func.func @transform_1(%arg0: i32, %arg1: memref<8x2xi32, #tpu.memory_space<smem>>) -> (i32, i32) {
    %c0_i32 = arith.constant 0 : i32
    %c0_i32_0 = arith.constant 0 : i32
    %c0_i32_1 = arith.constant 0 : i32
    return %c0_i32, %c0_i32_0 : i32, i32
  }
  func.func @transform_2(%arg0: i32, %arg1: memref<8x2xi32, #tpu.memory_space<smem>>) -> (i32, i32) {
    %c0_i32 = arith.constant 0 : i32
    %c0_i32_0 = arith.constant 0 : i32
    %c0_i32_1 = arith.constant 0 : i32
    return %c0_i32, %c0_i32_0 : i32, i32
  }
  func.func @transform_3(%arg0: i32, %arg1: memref<8x2xi32, #tpu.memory_space<smem>>) -> (i32, i32) {
    %c0_i32 = arith.constant 0 : i32
    %c0_i32_0 = arith.constant 0 : i32
    %c0_i32_1 = arith.constant 0 : i32
    return %c0_i32, %c0_i32_0 : i32, i32
  }
  func.func @transform_4(%arg0: i32, %arg1: memref<8x2xi32, #tpu.memory_space<smem>>) -> (i32, i32) {
    %c0_i32 = arith.constant 0 : i32
    %c0_i32_0 = arith.constant 0 : i32
    %c0_i32_1 = arith.constant 0 : i32
    return %c0_i32, %c0_i32_0 : i32, i32
  }
}

</mosaic_0001>

<bundles_post_ra>
// kernel: tpu_custom_call.1
= control target key start
LH: loop header
LB: loop body
LE: loop exit
PB: predicated region body
PF: predicated region fallthrough
CT: control target
= control target key end

     0   :  { %s1062_s0 = inlined_call_operand.vmem [shape: s32[8,2], index: 0, kind: input, shape index: {}]   ;;  %s1063_s1 = inlined_call_operand.vmem [shape: f32[10,1,128], index: 1, kind: input, shape index: {}]   ;;  %s1064_s2 = inlined_call_operand.hbm [shape: bf16[256,128], index: 2, kind: input, shape index: {}]   ;;  %s1065_s3 = inlined_call_operand.hbm [shape: bf16[128,128], index: 3, kind: input, shape index: {}]   ;;  %s1066_s4 = inlined_call_operand.hbm [shape: f32[10,256], index: 4, kind: input, shape index: {}]   ;;  %s1067_s5 = inlined_call_operand.hbm [shape: f32[8,128], index: 5, kind: output, shape index: {}]  }
   0x1   :  { %s10_s20 = sshll.u32 %s1062_s0, 4  ;;  %s11_s20 = int_to_ptr.vmem [resolvable:$true] %s10_s20 }
   0x2   :  { %s755_s21 = scalar_lea.vmem %s11_s20, 128  ;;  %p760_p1 = scmp.lt.s32.totalorder %s11_s20, %s11_s20 }
   0x3   :  { %p756_p0 = scmp.ne.s32.totalorder %s11_s20, %s755_s21  ;;  %p761_p2 = scmp.lt.s32.totalorder %s755_s21, %s755_s21 }
   0x5   :  { %p762_p3 = por %p761_p2, %p760_p1 }
   0x7   :  { %p763_p4 = pnand %p762_p3, %p756_p0 }
   0x9   :  { %766 = shalt.err (!%p763_p4)  }
   0xa   :  { %s863_s22 = smov [#allocation4]  }
   0xb   :  { %13 = dma.vmem_to_smem %s11_s20, 128, %s863_s22, [#allocation3] }
   0xc   :  { %855 = dma.done.wait [#allocation3], 128 }
   0xd   :  { %856 = vsyncadd [#allocation3], 4294967168 }
   0xe   :  { %15 = sfence }
   0xf   :  { %16 = vsyncpa [#allocation6], 0 }
  0x10   :  { %17 = vsyncpa [#allocation9], 0 }
  0x11   :  { %18 = vsyncpa [#allocation7], 0  ;;  %s864_s23 = smov [#allocation8]   ;;  %s865_s25 = smov [#allocation5]  }
  0x12   :  { %s38_s24 = sshll.u32 %s864_s23, 4  ;;  %s26_s0 = sshll.u32 %s865_s25, 4  ;;  %s39_s24 = int_to_ptr.vmem [resolvable:$true] %s38_s24  ;;  %s909_s0 = int_to_ptr.vmem [resolvable:$true] %s26_s0 }
  0x13   :  { %s767_s28 = scalar_lea.hbm %s1065_s3, 1024 }
  0x14   :  { %p768_p5 = scmp.ne.s32.totalorder %s1065_s3, %s767_s28  ;;  %p771_p6 = scmp.lt.u32.totalorder %s767_s28, %s1065_s3 }
  0x16   :  { %p773_p7 = pnand %p771_p6, %p768_p5 }
  0x18   :  { %776 = shalt.err (!%p773_p7)
}
  0x19   :  { %s777_s8 = scalar_lea.vmem %s39_s24, 1024  ;;  %p782_p9 = scmp.lt.s32.totalorder %s39_s24, %s39_s24 }
  0x1a   :  { %p778_p8 = scmp.ne.s32.totalorder %s39_s24, %s777_s8  ;;  %p783_p10 = scmp.lt.s32.totalorder %s777_s8, %s777_s8 }
  0x1c   :  { %p784_p11 = por %p783_p10, %p782_p9 }
  0x1e   :  { %p785_p12 = pnand %p784_p11, %p778_p8 }
  0x20   :  { %788 = shalt.err (!%p785_p12)
}
  0x21   :  { %s866_s9 = smov 64   ;;  %s867_s10 = smov 4  }
  0x22   :  { %44 = dma.hbm_to_vmem [thread:$0]  %s1065_s3, 1024, %s39_s24, [#allocation9], %s866_s9, %s866_s9, %s867_s10  }
  0x23   :  { %s789_s15 = scalar_lea.hbm %s1064_s2, 2048 }
  0x24   :  { %p790_p13 = scmp.ne.s32.totalorder %s1064_s2, %s789_s15  ;;  %p793_p0 = scmp.lt.u32.totalorder %s789_s15, %s1064_s2 }
  0x26   :  { %p795_p1 = pnand %p793_p0, %p790_p13 }
  0x28   :  { %798 = shalt.err (!%p795_p1)
}
  0x29   :  { %s799_s20 = scalar_lea.vmem %s909_s0, 2048  ;;  %p804_p3 = scmp.lt.s32.totalorder %s909_s0, %s909_s0 }
  0x2a   :  { %p800_p2 = scmp.ne.s32.totalorder %s909_s0, %s799_s20  ;;  %p805_p4 = scmp.lt.s32.totalorder %s799_s20, %s799_s20 }
  0x2c   :  { %p806_p5 = por %p805_p4, %p804_p3 }
  0x2e   :  { %p807_p6 = pnand %p806_p5, %p800_p2 }
  0x30   :  { %810 = shalt.err (!%p807_p6)
}
  0x31   :  { %32 = dma.hbm_to_vmem [thread:$0]  %s1064_s2, 2048, %s909_s0, [#allocation6], %s866_s9, %s866_s9, %s867_s10  }
  0x32   :  { %s868_s22 = smov [#allocation10]   ;;  %s811_s26 = scalar_lea.hbm %s1066_s4, 512 }
  0x33   :  { %s50_s23 = sshll.u32 %s868_s22, 4  ;;  %p812_p7 = scmp.ne.s32.totalorder %s1066_s4, %s811_s26  ;;  %s51_s23 = int_to_ptr.vmem [resolvable:$true] %s50_s23 }
  0x34   :  { %p815_p8 = scmp.lt.u32.totalorder %s811_s26, %s1066_s4 }
  0x36   :  { %p817_p9 = pnand %p815_p8, %p812_p7 }
  0x38   :  { %820 = shalt.err (!%p817_p9)
}
  0x39   :  { %s821_s6 = scalar_lea.vmem %s51_s23, 512  ;;  %p826_p11 = scmp.lt.s32.totalorder %s51_s23, %s51_s23 }
  0x3a   :  { %p822_p10 = scmp.ne.s32.totalorder %s51_s23, %s821_s6  ;;  %p827_p12 = scmp.lt.s32.totalorder %s821_s6, %s821_s6 }
  0x3c   :  { %p828_p13 = por %p827_p12, %p826_p11 }
  0x3e   :  { %p829_p0 = pnand %p828_p13, %p822_p10 }
  0x40   :  { %832 = shalt.err (!%p829_p0)
}
  0x41   :  { %s869_s2 = smov 256   ;;  %s870_s0 = smov 16  }
  0x42   :  { %56 = dma.hbm_to_vmem [thread:$0]  %s1066_s4, 512, %s51_s23, [#allocation9], %s869_s2, %s869_s2, %s870_s0  }
  0x43   :  { %857 = dma.done.wait [#allocation6], 2048  }
  0x44   :  { %858 = vsyncadd [#allocation6], 4294965248 }
  0x45   :  { %859 = dma.done.wait [#allocation9], 1536  }
  0x46   :  { %860 = vsyncadd [#allocation9], 4294965760  ;;  %s952_s9 = sld [smem:[#allocation4]]  ;;  %s954_s10 = sld [smem:[#allocation4 + $0x1]]  ;;  %v723_v0 = vld [vmem:[#allocation5 + $0x40] sm:$0xff]   ;;  %v725_v2 = vld [vmem:[#allocation5 + $0x48] sm:$0xff]  }
  0x47   :  { %s956_s11 = sld [smem:[#allocation4 + $0x80]]  ;;  %s958_s12 = sld [smem:[#allocation4 + $0x81]]  ;;  %v724_v1 = vld [vmem:[#allocation5] sm:$0xff]   ;;  %658 = vmatprep.subr.bf16.mxu0 %v723_v0  ;;  %v726_v3 = vld [vmem:[#allocation5 + $0x8] sm:$0xff]   ;;  %v727_v4 = vld [vmem:[#allocation5 + $0x50] sm:$0xff]   ;;  %vm873_vm0 = vmmov 0  }
  0x48   :  { %s960_s13 = sld [smem:[#allocation4 + $0x100]]  ;;  %s962_s14 = sld [smem:[#allocation4 + $0x101]]  ;;  %659 = vmatpush3.bf16.msra.mxu0 %v724_v1  ;;  %v728_v5 = vld [vmem:[#allocation5 + $0x10] sm:$0xff]   ;;  %v729_v6 = vld [vmem:[#allocation5 + $0x58] sm:$0xff]   ;;  %v731_v8 = vld [vmem:[#allocation5 + $0x60] sm:$0xff]  }
  0x49   :  { %s964_s15 = sld [smem:[#allocation4 + $0x180]]  ;;  %s966_s16 = sld [smem:[#allocation4 + $0x181]]  ;;  %660 = vmatprep.subr.bf16.mxu0 %v725_v2  ;;  %v730_v7 = vld [vmem:[#allocation5 + $0x18] sm:$0xff]   ;;  %v732_v9 = vld [vmem:[#allocation5 + $0x20] sm:$0xff]   ;;  %v733_v10 = vld [vmem:[#allocation5 + $0x68] sm:$0xff]  }
  0x4a   :  { %s968_s4 = sld [smem:[#allocation4 + $0x200]]  ;;  %s970_s17 = sld [smem:[#allocation4 + $0x201]]  ;;  %v734_v14 = vld [vmem:[#allocation5 + $0x28] sm:$0xff]   ;;  %v735_v18 = vld [vmem:[#allocation5 + $0x70] sm:$0xff]   ;;  %v737_v26 = vld [vmem:[#allocation5 + $0x78] sm:$0xff]  }
  0x4b   :  { %s972_s18 = sld [smem:[#allocation4 + $0x280]]  ;;  %s974_s19 = sld [smem:[#allocation4 + $0x281]]  ;;  %v736_v25 = vld [vmem:[#allocation5 + $0x30] sm:$0xff]   ;;  %v738_v27 = vld [vmem:[#allocation5 + $0x38] sm:$0xff]  }
  0x4c   :  { %661 = vmatpush3.bf16.msra.mxu0 %v726_v3  ;;  %s68_s21 = scalar_lea.vmem %s1063_s1, %s952_s9  ;;  %s72_s24 = scalar_lea.vmem %s1063_s1, %s954_s10 }
  0x4d   :  { %662 = vmatprep.subr.bf16.mxu0 %v727_v4  ;;  %s76_s27 = scalar_lea.vmem %s1063_s1, %s956_s11  ;;  %s80_s30 = scalar_lea.vmem %s1063_s1, %s958_s12  ;;  %v69_v11 = vld [vmem:[%s68_s21] sm:$0x1] }
  0x4e   :  { %s84_s0 = scalar_lea.vmem %s1063_s1, %s960_s13  ;;  %s88_s9 = scalar_lea.vmem %s1063_s1, %s962_s14  ;;  %v73_v12 = vld [vmem:[%s72_s24] sm:$0x1]  ;;  %70 = vst [vmem:[#allocation2] sm:$0x1] %v69_v11 }
  0x4f   :  { %s92_s3 = scalar_lea.vmem %s1063_s1, %s964_s15  ;;  %s96_s23 = scalar_lea.vmem %s1063_s1, %s966_s16  ;;  %v77_v13 = vld [vmem:[%s76_s27] sm:$0x1]  ;;  %74 = vst [vmem:[#allocation2 + $0x8] sm:$0x1] %v73_v12 }
  0x50   :  { %663 = vmatpush3.bf16.msra.mxu0 %v728_v5  ;;  %s100_s26 = scalar_lea.vmem %s1063_s1, %s968_s4  ;;  %s104_s29 = scalar_lea.vmem %s1063_s1, %s970_s17  ;;  %78 = vst [vmem:[#allocation2 + $0x1] sm:$0x1] %v77_v13  ;;  %v81_v15 = vld [vmem:[%s80_s30] sm:$0x1] }
  0x51   :  { %664 = vmatprep.subr.bf16.mxu0 %v729_v6  ;;  %s108_s6 = scalar_lea.vmem %s1063_s1, %s972_s18  ;;  %s112_s7 = scalar_lea.vmem %s1063_s1, %s974_s19  ;;  %v85_v16 = vld [vmem:[%s84_s0] sm:$0x1]  ;;  %82 = vst [vmem:[#allocation2 + $0x9] sm:$0x1] %v81_v15  ;;  %v871_v6 = vmov 1966171168  }
  0x52   :  { %v89_v17 = vld [vmem:[%s88_s9] sm:$0x1]  ;;  %86 = vst [vmem:[#allocation2 + $0x2] sm:$0x1] %v85_v16  ;;  %s630_s4 = sld [smem:[#allocation4 + $0x300]]  ;;  %s631_s17 = sld [smem:[#allocation4 + $0x301]] }
  0x53   :  { %90 = vst [vmem:[#allocation2 + $0xa] sm:$0x1] %v89_v17  ;;  %v93_v19 = vld [vmem:[%s92_s3] sm:$0x1]  ;;  %s632_s18 = sld [smem:[#allocation4 + $0x380]]  ;;  %s633_s19 = sld [smem:[#allocation4 + $0x381]] }
  0x54   :  { %665 = vmatpush3.bf16.msra.mxu0 %v730_v7  ;;  %v97_v20 = vld [vmem:[%s96_s23] sm:$0x1]  ;;  %94 = vst [vmem:[#allocation2 + $0x3] sm:$0x1] %v93_v19  ;;  %v186_v7 = vunpack.c.l.s4 %v871_v6 }
  0x55   :  { %666 = vmatprep.subr.bf16.mxu0 %v731_v8  ;;  %v101_v21 = vld [vmem:[%s100_s26] sm:$0x1]  ;;  %98 = vst [vmem:[#allocation2 + $0xb] sm:$0x1] %v97_v20  ;;  %v188_v8 = vlaneseq }
  0x56   :  { %102 = vst [vmem:[#allocation2 + $0x4] sm:$0x1] %v101_v21  ;;  %v105_v22 = vld [vmem:[%s104_s29] sm:$0x1] }
  0x57   :  { %v109_v23 = vld [vmem:[%s108_s6] sm:$0x1]  ;;  %106 = vst [vmem:[#allocation2 + $0xc] sm:$0x1] %v105_v22 }
  0x58   :  { %667 = vmatpush3.bf16.msra.mxu0 %v732_v9  ;;  %v113_v24 = vld [vmem:[%s112_s7] sm:$0x1]  ;;  %110 = vst [vmem:[#allocation2 + $0x5] sm:$0x1] %v109_v23  ;;  %s116_s27 = scalar_lea.vmem %s1063_s1, %s630_s4  ;;  %s120_s8 = scalar_lea.vmem %s1063_s1, %s631_s17  ;;  %v187_v9 = vunpack.c.0.s8 %v186_v7 }
  0x59   :  { %668 = vmatprep.subr.bf16.mxu0 %v733_v10  ;;  %114 = vst [vmem:[#allocation2 + $0xd] sm:$0x1] %v113_v24  ;;  %v117_v28 = vld [vmem:[%s116_s27] sm:$0x1]  ;;  %s124_s20 = scalar_lea.vmem %s1063_s1, %s632_s18  ;;  %s128_s11 = scalar_lea.vmem %s1063_s1, %s633_s19  ;;  %v189_v10 = vshrl.u32 %v188_v8, 7 }
  0x5a   :  { %v121_v29 = vld [vmem:[%s120_s8] sm:$0x1]  ;;  %118 = vst [vmem:[#allocation2 + $0x6] sm:$0x1] %v117_v28  ;;  %v137_v8 = vld [vmem:[#allocation10 + $0x3] ss:$0 sm:$0xff] }
  0x5b   :  { %122 = vst [vmem:[#allocation2 + $0xe] sm:$0x1] %v121_v29  ;;  %v125_v30 = vld [vmem:[%s124_s20] sm:$0x1]  ;;  %v190_v12 = vsub.s32 %v187_v9, %v189_v10  ;;  %v208_v19 = vsub.s32 1, %v189_v10  ;;  %s875_s1 = smov [#allocation11]  }
  0x5c   :  { %669 = vmatpush3.bf16.msra.mxu0 %v734_v14  ;;  %v129_v31 = vld [vmem:[%s128_s11] sm:$0x1]  ;;  %126 = vst [vmem:[#allocation2 + $0x7] sm:$0x1] %v125_v30  ;;  %s593_s23 = sshll.u32 %s875_s1, 4  ;;  %s594_s23 = int_to_ptr.vmem [resolvable:$true] %s593_s23 }
  0x5d   :  { %670 = vmatprep.subr.bf16.mxu0 %v735_v18  ;;  %130 = vst [vmem:[#allocation2 + $0xf] sm:$0x1] %v129_v31  ;;  %v133_v16 = vld [vmem:[#allocation10] ss:$8 sm:$0x3]  ;;  %v204_v18 = vsub.s32 0, %v189_v10  ;;  %p838_p2 = scmp.lt.s32.totalorder %s594_s23, %s594_s23 }
  0x5e   :  { %s833_s12 = scalar_lea.vmem %s594_s23, 128 }
  0x5f   :  { %p834_p1 = scmp.ne.s32.totalorder %s594_s23, %s833_s12  ;;  %p839_p3 = scmp.lt.s32.totalorder %s833_s12, %s833_s12 }
  0x60   :  { %671 = vmatpush3.bf16.msra.mxu0 %v736_v25 }
  0x61   :  { %672 = vmatprep.subr.bf16.mxu0 %v737_v26  ;;  %p840_p4 = por %p839_p3, %p838_p2 }
  0x63   :  { %v1036_v32 = vld [vmem:[#allocation2] sm:$0xff]  ;;  %p841_p5 = pnand %p840_p4, %p834_p1 }
  0x64   :  { %673 = vmatpush3.bf16.msra.mxu0 %v738_v27  ;;  %v1038_v33 = vld [vmem:[#allocation2 + $0x8] sm:$0xff]  ;;  %v144_v34 = vrot.slane %v1036_v32, 4  ;;  %v156_v36 = vmul.f32 %v1036_v32, %v1036_v32  ;;  %v135_v27 = vld [vmem:[#allocation10 + $0x1] ss:$8 sm:$0x3] }
  0x65   :  { %v150_v35 = vrot.slane %v1038_v33, 4  ;;  %v157_v37 = vmul.f32 %v1038_v33, %v1038_v33 }
  0x66   :  { %v145_v38 = vadd.f32 %v144_v34, %v1036_v32  ;;  %v158_v40 = vrot.slane %v156_v36, 4 }
  0x67   :  { %v151_v39 = vadd.f32 %v150_v35, %v1038_v33  ;;  %v164_v41 = vrot.slane %v157_v37, 4 }
  0x68   :  { %v146_v42 = vrot.slane %v145_v38, 2  ;;  %v159_v44 = vadd.f32 %v158_v40, %v156_v36  ;;  %v739_v40 = vld [vmem:[#allocation8] sm:$0xff]  }
  0x69   :  { %v152_v43 = vrot.slane %v151_v39, 2  ;;  %v165_v45 = vadd.f32 %v164_v41, %v157_v37  ;;  %v872_v41 = vmov 0.0  }
  0x6a   :  { %v147_v46 = vadd.f32 %v146_v42, %v145_v38  ;;  %v160_v48 = vrot.slane %v159_v44, 2  ;;  %689 = vmatprep.subr.bf16.mxu1 %v872_v41  ;;  %v740_v42 = vld [vmem:[#allocation8 + $0x8] sm:$0xff]   ;;  %705 = vmatprep.mubr.msk.bf16.mxu1 %vm873_vm0, %v872_v41 }
  0x6b   :  { %v153_v47 = vadd.f32 %v152_v43, %v151_v39  ;;  %v166_v49 = vrot.slane %v165_v45, 2  ;;  %690 = vmatpush3.bf16.msra.mxu1 %v739_v40  ;;  %v741_v43 = vld [vmem:[#allocation8 + $0x10] sm:$0xff]  }
  0x6c   :  { %v148_v50 = vrot.slane %v147_v46, 1  ;;  %v161_v52 = vadd.f32 %v160_v48, %v159_v44  ;;  %691 = vmatprep.subr.bf16.mxu1 %v872_v41  ;;  %v744_v44 = vld [vmem:[#allocation8 + $0x28] sm:$0xff]   ;;  %v136_v48 = vld [vmem:[#allocation10 + $0x2] ss:$0 sm:$0xff] }
  0x6d   :  { %v154_v51 = vrot.slane %v153_v47, 1  ;;  %v167_v53 = vadd.f32 %v166_v49, %v165_v45  ;;  %v745_v45 = vld [vmem:[#allocation8 + $0x30] sm:$0xff]  }
  0x6e   :  { %v149_v54 = vadd.f32 %v148_v50, %v147_v46  ;;  %v162_v56 = vrot.slane %v161_v52, 1  ;;  %v746_v46 = vld [vmem:[#allocation8 + $0x38] sm:$0xff]  }
  0x6f   :  { %v155_v55 = vadd.f32 %v154_v51, %v153_v47  ;;  %v168_v57 = vrot.slane %v167_v53, 1  ;;  %692 = vmatpush3.bf16.msra.mxu1 %v740_v42 }
  0x70   :  { %v163_v58 = vadd.f32 %v162_v56, %v161_v52  ;;  %v170_v60 = vmul.f32 0.125, %v149_v54  ;;  %693 = vmatprep.subr.bf16.mxu1 %v872_v41 }
  0x71   :  { %v169_v59 = vadd.f32 %v168_v57, %v167_v53  ;;  %v171_v61 = vmul.f32 0.125, %v155_v55 }
  0x72   :  { %v172_v62 = vmul.f32 0.125, %v163_v58  ;;  %v174_v0 = vmul.f32 %v170_v60, %v170_v60 }
  0x73   :  { %v173_v63 = vmul.f32 0.125, %v169_v59  ;;  %v175_v1 = vmul.f32 %v171_v61, %v171_v61  ;;  %694 = vmatpush3.bf16.msra.mxu1 %v741_v43 }
  0x74   :  { %v176_v2 = vsub.f32 %v172_v62, %v174_v0  ;;  %695 = vmatprep.subr.bf16.mxu1 %v872_v41 }
  0x75   :  { %v177_v3 = vsub.f32 %v173_v63, %v175_v1 }
  0x76   :  { %v178_v4 = vadd.f32 1e-05, %v176_v2 }
  0x77   :  { %v179_v5 = vadd.f32 1e-05, %v177_v3 }
  0x78   :  { %747 = vrsqrt.f32 %v178_v4 }
  0x79   :  { %749 = vrsqrt.f32 %v179_v5 }
  0x82   :  { %v748_v11 = vpop.eup %747 }
  0x83   :  { %v750_v13 = vpop.eup %749 }
  0x84   :  { %v184_v14 = vcombine.low %v748_v11, %v750_v13  ;;  %v138_v11 = vld [vmem:[#allocation10 + $0x4] ss:$0 sm:$0xff] }
  0x86   :  { %v191_v15 = vrot.slane %v184_v14, %v190_v12 }
  0x88   :  { %v198_v17 = vrot.slane %v191_v15, %v190_v12 }
  0x8a   :  { %v200_v20 = vmul.f32 %v198_v17, %v133_v16 }
  0x8c   :  { %v205_v21 = vrot.slane %v200_v20, %v204_v18  ;;  %v209_v22 = vrot.slane %v200_v20, %v208_v19 }
  0x8e   :  { %v212_v23 = vmul.f32 %v205_v21, %v170_v60  ;;  %v213_v24 = vmul.f32 %v209_v22, %v171_v61  ;;  %v234_v30 = vmul.f32 %v209_v22, %v1038_v33  ;;  %v233_v31 = vmul.f32 %v205_v21, %v1036_v32  ;;  %v742_v32 = vld [vmem:[#allocation8 + $0x18] sm:$0xff]   ;;  %v743_v33 = vld [vmem:[#allocation8 + $0x20] sm:$0xff]  }
  0x8f   :  { %696 = vmatpush3.bf16.msra.mxu1 %v742_v32 }
  0x90   :  { %v216_v25 = vcombine.low %v212_v23, %v213_v24  ;;  %697 = vmatprep.subr.bf16.mxu1 %v872_v41 }
  0x92   :  { %v223_v26 = vrot.slane %v216_v25, %v190_v12 }
  0x93   :  { %698 = vmatpush3.bf16.msra.mxu1 %v743_v33  ;;  %v140_v33 = vld [vmem:[#allocation10 + $0x6] ss:$0 sm:$0xff] }
  0x94   :  { %v230_v28 = vrot.slane %v223_v26, %v190_v12  ;;  %699 = vmatprep.subr.bf16.mxu1 %v872_v41 }
  0x96   :  { %v232_v29 = vsub.f32 %v135_v27, %v230_v28 }
  0x97   :  { %700 = vmatpush3.bf16.msra.mxu1 %v744_v44 }
  0x98   :  { %v243_v34 = vrot.slane %v232_v29, %v208_v19  ;;  %v239_v35 = vrot.slane %v232_v29, %v204_v18  ;;  %701 = vmatprep.subr.bf16.mxu1 %v872_v41  ;;  %v139_v19 = vld [vmem:[#allocation10 + $0x5] ss:$0 sm:$0xff] }
  0x9a   :  { %v247_v36 = vadd.f32 %v243_v34, %v234_v30  ;;  %v246_v37 = vadd.f32 %v239_v35, %v233_v31 }
  0x9b   :  { %702 = vmatpush3.bf16.msra.mxu1 %v745_v45 }
  0x9c   :  { %v249_v38 = vpack.c.bf16 %v247_v36, %v247_v36  ;;  %v248_v39 = vpack.c.bf16 %v246_v37, %v246_v37  ;;  %703 = vmatprep.subr.bf16.mxu1 %v872_v41 }
  0x9e   :  { %410 = vmatprep.mubr.bf16.mxu0 %v249_v38 }
  0x9f   :  { %411 = vmatmul.mubr.bf16.vlgmr.msra.gmra.mrb[0].mxu0 %v248_v39  ;;  %704 = vmatpush3.bf16.msra.mxu1 %v746_v46  ;;  %v141_v46 = vld [vmem:[#allocation10 + $0x7] ss:$0 sm:$0xff] }
 0x172   :  { %v674_v47 = vpop.f32.mrb[0].mxu0 }
 0x173   :  { %v675_v49 = vpop.f32.mrb[1].mxu0 }
 0x174   :  { %v676_v50 = vadd.f32 %v675_v49, %v674_v47  ;;  %v677_v51 = vpop.f32.mrb[2].mxu0 }
 0x175   :  { %v678_v52 = vpop.f32.mrb[3].mxu0  ;;  %v142_v51 = vld [vmem:[#allocation10 + $0x10] ss:$0 sm:$0xff] }
 0x176   :  { %v413_v53 = vadd.f32 %v676_v50, %v136_v48 }
 0x178   :  { %v418_v54 = vrot.slane %v413_v53, 4  ;;  %v424_v55 = vmul.f32 %v413_v53, %v413_v53 }
 0x17a   :  { %v419_v56 = vadd.f32 %v418_v54, %v413_v53  ;;  %v425_v57 = vrot.slane %v424_v55, 4 }
 0x17c   :  { %v420_v58 = vrot.slane %v419_v56, 2  ;;  %v426_v59 = vadd.f32 %v425_v57, %v424_v55  ;;  %v874_v55 = vmov 0  }
 0x17d   :  { %722 = vset.pattern.permute.xlu0 %v874_v55 }
 0x17e   :  { %v421_v60 = vadd.f32 %v420_v58, %v419_v56  ;;  %v427_v61 = vrot.slane %v426_v59, 2  ;;  %v143_v56 = vld [vmem:[#allocation10 + $0x11] ss:$0 sm:$0xff] }
 0x180   :  { %v422_v62 = vrot.slane %v421_v60, 1  ;;  %v428_v63 = vadd.f32 %v427_v61, %v426_v59 }
 0x182   :  { %v423_v0 = vadd.f32 %v422_v62, %v421_v60  ;;  %v429_v1 = vrot.slane %v428_v63, 1 }
 0x184   :  { %v430_v2 = vadd.f32 %v429_v1, %v428_v63  ;;  %v431_v3 = vmul.f32 0.125, %v423_v0 }
 0x186   :  { %v432_v4 = vmul.f32 0.125, %v430_v2  ;;  %v433_v5 = vmul.f32 %v431_v3, %v431_v3 }
 0x188   :  { %v434_v6 = vsub.f32 %v432_v4, %v433_v5 }
 0x18a   :  { %v435_v7 = vadd.f32 1e-05, %v434_v6 }
 0x18c   :  { %751 = vrsqrt.f32 %v435_v7 }
 0x196   :  { %v752_v9 = vpop.eup %751 }
 0x197   :  { %v437_v10 = vmul.f32 %v752_v9, %v137_v8 }
 0x199   :  { %v438_v12 = vmul.f32 %v437_v10, %v431_v3  ;;  %v440_v13 = vmul.f32 %v437_v10, %v413_v53 }
 0x19b   :  { %v439_v14 = vsub.f32 %v138_v11, %v438_v12 }
 0x19d   :  { %v441_v15 = vadd.f32 %v440_v13, %v439_v14 }
 0x19f   :  { %vm442_vm1 = vcmp.gt.f32.partialorder %v441_v15, 0.0  ;;  %v443_v16 = vmul.f32 0.01, %v441_v15 }
 0x1a1   :  { %v444_v17 = vsel %vm442_vm1, %v441_v15, %v443_v16 }
 0x1a2   :  { %v445_v18 = vpack.c.bf16 %v444_v17, %v444_v17 }
 0x1a4   :  { %706 = vmatmul.mubr.bf16.vlgmr.msra.gmra.mrb[0].mxu1 %v445_v18 }
 0x277   :  { %v544_v20 = vpop.f32.mrb[0].mxu1 }
 0x278   :  { %v545_v21 = vadd.f32 %v544_v20, %v139_v19  ;;  %v707_v22 = vpop.f32.mrb[1].mxu1 }
 0x279   :  { %v547_v23 = vpop.f32.mrb[2].mxu1 }
 0x27a   :  { %v550_v24 = vrot.slane %v545_v21, 4  ;;  %v556_v25 = vmul.f32 %v545_v21, %v545_v21  ;;  %v708_v26 = vpop.f32.mrb[3].mxu1 }
 0x27c   :  { %v551_v27 = vadd.f32 %v550_v24, %v545_v21  ;;  %v557_v28 = vrot.slane %v556_v25, 4 }
 0x27e   :  { %v552_v29 = vrot.slane %v551_v27, 2  ;;  %v558_v30 = vadd.f32 %v557_v28, %v556_v25 }
 0x280   :  { %v553_v31 = vadd.f32 %v552_v29, %v551_v27  ;;  %v559_v34 = vrot.slane %v558_v30, 2 }
 0x282   :  { %v554_v35 = vrot.slane %v553_v31, 1  ;;  %v560_v36 = vadd.f32 %v559_v34, %v558_v30 }
 0x284   :  { %v561_v37 = vrot.slane %v560_v36, 1  ;;  %v555_v38 = vadd.f32 %v554_v35, %v553_v31 }
 0x286   :  { %v562_v39 = vadd.f32 %v561_v37, %v560_v36  ;;  %v563_v40 = vmul.f32 0.125, %v555_v38 }
 0x288   :  { %v564_v41 = vmul.f32 0.125, %v562_v39  ;;  %v565_v42 = vmul.f32 %v563_v40, %v563_v40 }
 0x28a   :  { %v566_v43 = vsub.f32 %v564_v41, %v565_v42 }
 0x28c   :  { %v567_v32 = vadd.f32 1e-05, %v566_v43 }
 0x28e   :  { %753 = vrsqrt.f32 %v567_v32 }
 0x298   :  { %v754_v44 = vpop.eup %753 }
 0x299   :  { %v569_v45 = vmul.f32 %v754_v44, %v140_v33 }
 0x29b   :  { %v570_v47 = vmul.f32 %v569_v45, %v563_v40  ;;  %v572_v49 = vmul.f32 %v569_v45, %v545_v21 }
 0x29d   :  { %v571_v48 = vsub.f32 %v141_v46, %v570_v47 }
 0x29f   :  { %v573_v50 = vadd.f32 %v572_v49, %v571_v48 }
 0x2a1   :  { %vm574_vm2 = vcmp.gt.f32.partialorder %v573_v50, 0.0  ;;  %v575_v52 = vmul.f32 0.01, %v573_v50 }
 0x2a3   :  { %v576_v53 = vsel %vm574_vm2, %v573_v50, %v575_v52 }
 0x2a4   :  { %v577_v54 = vmul.f32 %v576_v53, %v142_v51 }
 0x2a6   :  { %578 = vadd.xlane.f32.xlu0 %v577_v54 }
 0x333   :  { %v579_v57 = vpop.xlane.xlu0 %578 }
 0x334   :  { %v580_v58 = vadd.f32 %v579_v57, %v143_v56 }
 0x336   :  { %583 = vperm.xlu0 %722, %v580_v58  }
 0x3b5   :  { %v584_v59 = vpop.permute.xlu0 %583 }
 0x3b6   :  { %586 = vst [vmem:[#allocation11] sm:$0xff] %v584_v59 }
 0x3b7   :  { %844 = shalt.err (!%p841_p5)
}
 0x3b8   :  { %s845_s13 = scalar_lea.hbm %s1067_s5, 128 }
 0x3b9   :  { %p846_p6 = scmp.ne.s32.totalorder %s1067_s5, %s845_s13  ;;  %p849_p7 = scmp.lt.u32.totalorder %s845_s13, %s1067_s5 }
 0x3bb   :  { %p851_p8 = pnand %p849_p7, %p846_p6 }
 0x3bd   :  { %854 = shalt.err (!%p851_p8)
}
 0x3be   :  { %596 = dma.vmem_to_hbm [thread:$0]  %s594_s23, 128, %s1067_s5, [#allocation7]  }
 0x3bf   :  { %861 = dma.done.wait [#allocation7], 128  }
 0x3c0   :  { %862 = vsyncadd [#allocation7], 4294967168 }
 0x3c1   :  { %600 = vsyncpa [#allocation6], 1 }
 0x3c2   :  { %601 = vsyncpa [#allocation9], 1 }
 0x3c3   :  { %602 = vsyncpa [#allocation7], 1 }

</bundles_post_ra>
